<compile_context>
chip_gen: v7x
topology: tpu7x:2x2x1
jax: 0.10.0
libtpu: 0.0.40
codegen_flags: <defaults>
</compile_context>

<pallas_src>
import jax
import jax.numpy as jnp
from jax import lax
from jax.experimental import pallas as pl
from jax.experimental.pallas import tpu as pltpu


def _round_up(x, m):
    return ((x + m - 1) // m) * m


def _pick_block(dim, candidates):
    # Largest candidate that divides `dim`, else the full dim (full-extent
    # blocks are exempt from the (8,128) divisibility rule).
    for c in candidates:
        if dim % c == 0:
            return c
    return dim


def mlp_kernel(x_ref, w1_ref, b1_ref, w2_ref, b2_ref, o_ref, acc_ref):
    """One (batch-tile, hidden-tile) grid step.

    x_ref  : (bm, in)      activation tile
    w1_ref : (th, in)      fc1 weight slab (torch layout (hidden, in))
    b1_ref : (1, th)       fc1 bias slab
    w2_ref : (out_p, th)   fc2 weight slab (torch layout (out, hidden), lane-padded)
    b2_ref : (1, out_p)    fc2 bias (lane-padded)
    o_ref  : (bm, out_p)   lane-dense output tile
    acc_ref: (bm, out_p)   f32 accumulator across hidden tiles
    """
    h_idx = pl.program_id(1)

    @pl.when(h_idx == 0)
    def _():
        acc_ref[...] = jnp.zeros_like(acc_ref)

    x = x_ref[...]
    # (bm, in) . (th, in) contracting `in`  ->  (bm, th)   [== x @ W1^T]
    h = lax.dot_general(x, w1_ref[...], (((1,), (1,)), ((), ())),
                        preferred_element_type=jnp.float32)
    h = jnp.maximum(h + b1_ref[...], 0.0)          # bias + ReLU (VPU, f32)
    # (bm, th) . (out_p, th) contracting `th` -> (bm, out_p)   [== h @ W2^T]
    acc_ref[...] += lax.dot_general(h.astype(w2_ref.dtype), w2_ref[...],
                                    (((1,), (1,)), ((), ())),
                                    preferred_element_type=jnp.float32)

    @pl.when(h_idx == pl.num_programs(1) - 1)
    def _():
        o_ref[...] = (acc_ref[...] + b2_ref[...]).astype(o_ref.dtype)


def mlp_forward(x, w1, b1, w2, b2, *, block_m=None, block_h=None):
    """Fused MLP: relu(x @ w1.T + b1) @ w2.T + b2.

    x: (B, in); w1: (hidden, in); b1: (hidden,); w2: (out, hidden); b2: (out,)
    Weights are consumed in torch layout (no HBM transpose per call).
    """
    B, in_size = x.shape
    hidden = w1.shape[0]
    out_size = w2.shape[0]

    # Lane-dense output: pad the fc2 output dim to a multiple of 128.
    out_p = _round_up(out_size, 128)
    if out_p != out_size:
        w2 = jnp.pad(w2, ((0, out_p - out_size), (0, 0)))
        b2 = jnp.pad(b2, (0, out_p - out_size))
    b1_2d = b1.reshape(1, hidden)
    b2_2d = b2.reshape(1, out_p)

    # Batch tile: real tile (multiple of 8, up to 256) so the grid has >1 step
    # and the pipeline / megacore actually engage on big batches.
    bm = block_m if block_m is not None else _pick_block(B, (256, 128, 64, 32, 16, 8))
    assert B % bm == 0, "block_m must divide the batch"
    # Hidden tile: 128-aligned (or full) so b1/W2 slabs satisfy (8,128) tiling.
    th = block_h if block_h is not None else _pick_block(hidden, (512, 256, 128))
    assert hidden % th == 0, "block_h must divide hidden"

    grid = (B // bm, hidden // th)

    itemsize = jnp.dtype(x.dtype).itemsize
    cost = pl.CostEstimate(
        flops=2 * B * in_size * hidden + 2 * B * hidden * out_p,
        transcendentals=0,
        bytes_accessed=(x.size + w1.size + b1.size + w2.size + b2.size
                        + B * out_p) * itemsize,
    )

    # Scoped VMEM sized from the actual tile footprint (double-buffered tiles
    # + f32 accumulator) with headroom, clamped to a safe range.
    tile_bytes = (bm * in_size + th * in_size + th + out_p * th + out_p
                  + bm * out_p) * itemsize
    vmem_limit = int(min(100 * 2 ** 20,
                         max(32 * 2 ** 20, 3 * tile_bytes + bm * out_p * 4)))

    out_padded = pl.pallas_call(
        mlp_kernel,
        out_shape=jax.ShapeDtypeStruct((B, out_p), x.dtype),
        grid_spec=pltpu.PrefetchScalarGridSpec(
            num_scalar_prefetch=0,
            grid=grid,
            in_specs=[
                pl.BlockSpec((bm, in_size), lambda i, h: (i, 0)),   # x tile
                pl.BlockSpec((th, in_size), lambda i, h: (h, 0)),   # W1 slab
                pl.BlockSpec((1, th),       lambda i, h: (0, h)),   # b1 slab
                pl.BlockSpec((out_p, th),   lambda i, h: (0, h)),   # W2 slab
                pl.BlockSpec((1, out_p),    lambda i, h: (0, 0)),   # b2
            ],
            out_specs=pl.BlockSpec((bm, out_p), lambda i, h: (i, 0)),
            scratch_shapes=[pltpu.VMEM((bm, out_p), jnp.float32)],
        ),
        compiler_params=pltpu.CompilerParams(
            dimension_semantics=("parallel", "arbitrary"),
            vmem_limit_bytes=vmem_limit,
        ),
        cost_estimate=cost,
    )(x, w1, b1_2d, w2, b2_2d)

    return out_padded[:, :out_size] if out_p != out_size else out_padded


def reference_mlp(x, w1, b1, w2, b2):
    h = jnp.maximum(x @ w1.T + b1, 0.0)
    return h @ w2.T + b2


if __name__ == "__main__":
    # Small shapes consistent with the module's forward.
    batch, input_size, hidden_size, output_size = 8, 32, 64, 16

    key = jax.random.PRNGKey(0)
    kx, kw1, kb1, kw2, kb2 = jax.random.split(key, 5)

    x = jax.random.normal(kx, (batch, input_size), dtype=jnp.float32)
    # Deterministic parameter init (PyTorch-like uniform fan-in scaling).
    bound1 = 1.0 / (input_size ** 0.5)
    w1 = jax.random.uniform(kw1, (hidden_size, input_size), jnp.float32,
                            -bound1, bound1)
    b1 = jax.random.uniform(kb1, (hidden_size,), jnp.float32, -bound1, bound1)
    bound2 = 1.0 / (hidden_size ** 0.5)
    w2 = jax.random.uniform(kw2, (output_size, hidden_size), jnp.float32,
                            -bound2, bound2)
    b2 = jax.random.uniform(kb2, (output_size,), jnp.float32, -bound2, bound2)

    out = mlp_forward(x, w1, b1, w2, b2)
    out = jax.block_until_ready(out)

    ref = reference_mlp(x, w1, b1, w2, b2)
    assert out.shape == (batch, output_size)
    assert jnp.allclose(out, ref, atol=1e-5, rtol=1e-5), "mismatch vs reference"

    print("KERNEL_OK")
</pallas_src>

<mosaic_0001>
module attributes {stable_mosaic.version = 11 : i64} {
  func.func @mlp_kernel(%arg0: i32, %arg1: i32, %arg2: memref<8x32xf32, #tpu.memory_space<vmem>>, %arg3: memref<64x32xf32, #tpu.memory_space<vmem>>, %arg4: memref<1x64xf32, #tpu.memory_space<vmem>>, %arg5: memref<128x64xf32, #tpu.memory_space<vmem>>, %arg6: memref<1x128xf32, #tpu.memory_space<vmem>>, %arg7: memref<8x128xf32, #tpu.memory_space<vmem>>, %arg8: memref<8x128xf32, #tpu.memory_space<vmem>>) attributes {dimension_semantics = [#tpu.dimension_semantics<parallel>, #tpu.dimension_semantics<arbitrary>], iteration_bounds = array<i64: 1, 1>, scalar_prefetch = 0 : i64, scratch_operands = 1 : i64, tpu.core_type = #tpu.core_type<tc>, window_params = [{transform_indices = @transform_0, window_bounds = array<i64: 8, 32>}, {transform_indices = @transform_1, window_bounds = array<i64: 64, 32>}, {transform_indices = @transform_2, window_bounds = array<i64: 1, 64>}, {transform_indices = @transform_3, window_bounds = array<i64: 128, 64>}, {pipeline_mode = #tpu.pipeline_mode<synchronous>, transform_indices = @transform_4, window_bounds = array<i64: 1, 128>}, {transform_indices = @transform_5, window_bounds = array<i64: 8, 128>}]} {
    %c0_i32 = arith.constant 0 : i32
    %0 = arith.cmpi eq, %arg1, %c0_i32 : i32
    %1 = arith.extui %0 : i1 to i32
    %c0_i32_0 = arith.constant 0 : i32
    %2 = arith.cmpi ne, %1, %c0_i32_0 : i32
    scf.if %2 {
      %cst_16 = arith.constant 0.000000e+00 : f32
      %19 = vector.broadcast %cst_16 : f32 to vector<8x128xf32>
      %c0_17 = arith.constant 0 : index
      %c0_18 = arith.constant 0 : index
      %20 = vector.load %arg8[%c0_17, %c0_18] : memref<8x128xf32, #tpu.memory_space<vmem>>, vector<8x128xf32>
      tpu.vector_store %arg8[%c0_17, %c0_18], %19 {strides = array<i32>} : memref<8x128xf32, #tpu.memory_space<vmem>>, vector<8x128xf32>,
    } else {
    }
    %c0 = arith.constant 0 : index
    %c0_1 = arith.constant 0 : index
    %3 = vector.load %arg2[%c0, %c0_1] : memref<8x32xf32, #tpu.memory_space<vmem>>, vector<8x32xf32>
    %c0_2 = arith.constant 0 : index
    %c0_3 = arith.constant 0 : index
    %4 = vector.load %arg3[%c0_2, %c0_3] : memref<64x32xf32, #tpu.memory_space<vmem>>, vector<64x32xf32>
    %cst = arith.constant dense<0.000000e+00> : vector<8x64xf32>
    %5 = tpu.matmul %3, %4, %cst {dimension_numbers = #tpu.dot_dimension_numbers<[1], [1], [0], [0], [0, 0, 1, 0], [], []>} : vector<8x32xf32>, vector<64x32xf32>, vector<8x64xf32> -> vector<8x64xf32>
    %c0_4 = arith.constant 0 : index
    %c0_5 = arith.constant 0 : index
    %6 = vector.load %arg4[%c0_4, %c0_5] : memref<1x64xf32, #tpu.memory_space<vmem>>, vector<1x64xf32>
    %7 = vector.broadcast %6 : vector<1x64xf32> to vector<8x64xf32>
    %8 = arith.addf %5, %7 : vector<8x64xf32>
    %cst_6 = arith.constant 0.000000e+00 : f32
    %9 = vector.broadcast %cst_6 : f32 to vector<8x64xf32>
    %10 = arith.maximumf %8, %9 : vector<8x64xf32>
    %c0_7 = arith.constant 0 : index
    %c0_8 = arith.constant 0 : index
    %11 = vector.load %arg8[%c0_7, %c0_8] : memref<8x128xf32, #tpu.memory_space<vmem>>, vector<8x128xf32>
    %c0_9 = arith.constant 0 : index
    %c0_10 = arith.constant 0 : index
    %12 = vector.load %arg5[%c0_9, %c0_10] : memref<128x64xf32, #tpu.memory_space<vmem>>, vector<128x64xf32>
    %cst_11 = arith.constant dense<0.000000e+00> : vector<8x128xf32>
    %13 = tpu.matmul %10, %12, %cst_11 {dimension_numbers = #tpu.dot_dimension_numbers<[1], [1], [0], [0], [0, 0, 1, 0], [], []>} : vector<8x64xf32>, vector<128x64xf32>, vector<8x128xf32> -> vector<8x128xf32>
    %14 = arith.addf %11, %13 : vector<8x128xf32>
    %c0_12 = arith.constant 0 : index
    %c0_13 = arith.constant 0 : index
    %15 = vector.load %arg8[%c0_12, %c0_13] : memref<8x128xf32, #tpu.memory_space<vmem>>, vector<8x128xf32>
    tpu.vector_store %arg8[%c0_12, %c0_13], %14 {strides = array<i32>} : memref<8x128xf32, #tpu.memory_space<vmem>>, vector<8x128xf32>,
    %c0_i32_14 = arith.constant 0 : i32
    %16 = arith.cmpi eq, %arg1, %c0_i32_14 : i32
    %17 = arith.extui %16 : i1 to i32
    %c0_i32_15 = arith.constant 0 : i32
    %18 = arith.cmpi ne, %17, %c0_i32_15 : i32
    scf.if %18 {
      %c0_16 = arith.constant 0 : index
      %c0_17 = arith.constant 0 : index
      %19 = vector.load %arg8[%c0_16, %c0_17] : memref<8x128xf32, #tpu.memory_space<vmem>>, vector<8x128xf32>
      %c0_18 = arith.constant 0 : index
      %c0_19 = arith.constant 0 : index
      %20 = vector.load %arg6[%c0_18, %c0_19] : memref<1x128xf32, #tpu.memory_space<vmem>>, vector<1x128xf32>
      %21 = vector.broadcast %20 : vector<1x128xf32> to vector<8x128xf32>
      %22 = arith.addf %19, %21 : vector<8x128xf32>
      %c0_20 = arith.constant 0 : index
      %c0_21 = arith.constant 0 : index
      %23 = vector.load %arg7[%c0_20, %c0_21] : memref<8x128xf32, #tpu.memory_space<vmem>>, vector<8x128xf32>
      tpu.vector_store %arg7[%c0_20, %c0_21], %22 {strides = array<i32>} : memref<8x128xf32, #tpu.memory_space<vmem>>, vector<8x128xf32>,
    } else {
    }
    return
  }
  func.func @transform_0(%arg0: i32, %arg1: i32) -> (i32, i32) {
    %c0_i32 = arith.constant 0 : i32
    %c0_i32_0 = arith.constant 0 : i32
    return %arg0, %c0_i32 : i32, i32
  }
  func.func @transform_1(%arg0: i32, %arg1: i32) -> (i32, i32) {
    %c0_i32 = arith.constant 0 : i32
    %c0_i32_0 = arith.constant 0 : i32
    return %arg1, %c0_i32 : i32, i32
  }
  func.func @transform_2(%arg0: i32, %arg1: i32) -> (i32, i32) {
    %c0_i32 = arith.constant 0 : i32
    %c0_i32_0 = arith.constant 0 : i32
    return %c0_i32, %arg1 : i32, i32
  }
  func.func @transform_3(%arg0: i32, %arg1: i32) -> (i32, i32) {
    %c0_i32 = arith.constant 0 : i32
    %c0_i32_0 = arith.constant 0 : i32
    return %c0_i32, %arg1 : i32, i32
  }
  func.func @transform_4(%arg0: i32, %arg1: i32) -> (i32, i32) {
    %c0_i32 = arith.constant 0 : i32
    %c0_i32_0 = arith.constant 0 : i32
    %c0_i32_1 = arith.constant 0 : i32
    return %c0_i32, %c0_i32_0 : i32, i32
  }
  func.func @transform_5(%arg0: i32, %arg1: i32) -> (i32, i32) {
    %c0_i32 = arith.constant 0 : i32
    %c0_i32_0 = arith.constant 0 : i32
    return %arg0, %c0_i32 : i32, i32
  }
}

</mosaic_0001>

<bundles_post_ra>
// kernel: tpu_custom_call.1
= control target key start
LH: loop header
LB: loop body
LE: loop exit
PB: predicated region body
PF: predicated region fallthrough
CT: control target
= control target key end

     0   :  { %vm42_vm0 = vcmask 261120   ;;  %v493_v2 = vmov 0.0|0.0   ;;  %vm158_vm2 = vcmask 523264   ;;  %vm494_vm3 = vmmov 0   ;;  %s670_s0 = inlined_call_operand.vmem [shape: f32[8,32], index: 0, kind: input, shape index: {}]   ;;  %s671_s1 = inlined_call_operand.vmem [shape: f32[64,32], index: 1, kind: input, shape index: {}]   ;;  %s672_s2 = inlined_call_operand.vmem [shape: f32[1,64], index: 2, kind: input, shape index: {}]   ;;  %s673_s3 = inlined_call_operand.vmem [shape: f32[128,64], index: 3, kind: input, shape index: {}]   ;;  %s674_s4 = inlined_call_operand.vmem [shape: f32[1,128], index: 4, kind: input, shape index: {}]   ;;  %s675_s5 = inlined_call_operand.hbm [shape: f32[8,128], index: 5, kind: output, shape index: {}]  }
   0x1   :  { %v27_v0 = vld [vmem:[%s671_s1] sm:$0xff]  ;;  %v28_v1 = vld [vmem:[%s671_s1 + $0x8] sm:$0xff]  ;;  %417 = vmatprep.subr.bf16.mxu0 %v493_v2  ;;  %vm536_vm1 = vmpackc.low %vm42_vm0, %vm42_vm0  ;;  %433 = vmatprep.subr.bf16.mxu1 %v493_v2  ;;  %v495_v5 = vmov 0.0  }
   0x2   :  { %v418_v3 = vpack.c.bf16 %v28_v1, %v27_v0  ;;  %379 = vmatprep.mubr.msk.f32.mxu0 %vm494_vm3, %v495_v5  ;;  %414 = vmatprep.mubr.msk.f32.mxu1 %vm494_vm3, %v495_v5  ;;  %v142_v6 = vld [vmem:[%s673_s3] sm:$0xff]  ;;  %v143_v7 = vld [vmem:[%s673_s3 + $0x8] sm:$0xff]  ;;  %v29_v8 = vld [vmem:[%s671_s1 + $0x10] sm:$0xff] }
   0x3   :  { %v30_v9 = vld [vmem:[%s671_s1 + $0x18] sm:$0xff]  ;;  %v434_v10 = vpack.c.bf16 %v143_v7, %v142_v6  ;;  %vm558_vm4 = vmpackc.low %vm158_vm2, %vm158_vm2  ;;  %v144_v13 = vld [vmem:[%s673_s3 + $0x10] sm:$0xff] }
   0x4   :  { %420 = vmatpush3.bf16.xpose.msk.msra.mxu0 %vm536_vm1, %v418_v3  ;;  %v422_v12 = vpack.c.bf16 %v30_v9, %v29_v8  ;;  %v145_v14 = vld [vmem:[%s673_s3 + $0x18] sm:$0xff] }
   0x5   :  { %421 = vmatprep.subr.bf16.mxu0 %v493_v2  ;;  %436 = vmatpush3.bf16.xpose.msk.msra.mxu1 %vm558_vm4, %v434_v10 }
   0x6   :  { %437 = vmatprep.subr.bf16.mxu1 %v493_v2 }
   0x7   :  { %10 = vsyncpa [#allocation4], 0  ;;  %v438_v15 = vpack.c.bf16 %v145_v14, %v144_v13  ;;  %v31_v16 = vld [vmem:[%s671_s1 + $0x20] sm:$0xff]  ;;  %v32_v17 = vld [vmem:[%s671_s1 + $0x28] sm:$0xff]  ;;  %s496_s20 = smov [#allocation3]  }
   0x8   :  { %v426_v18 = vpack.c.bf16 %v32_v17, %v31_v16  ;;  %v146_v19 = vld [vmem:[%s673_s3 + $0x20] sm:$0xff]  ;;  %v147_v20 = vld [vmem:[%s673_s3 + $0x28] sm:$0xff]  ;;  %v33_v22 = vld [vmem:[%s671_s1 + $0x30] sm:$0xff] }
   0x9   :  { %v442_v21 = vpack.c.bf16 %v147_v20, %v146_v19  ;;  %v34_v23 = vld [vmem:[%s671_s1 + $0x38] sm:$0xff]  ;;  %v148_v25 = vld [vmem:[%s673_s3 + $0x30] sm:$0xff]  ;;  %v26_v28 = vld [vmem:[%s670_s0] sm:$0xff] }
   0xa   :  { %v430_v24 = vpack.c.bf16 %v34_v23, %v33_v22  ;;  %v149_v26 = vld [vmem:[%s673_s3 + $0x38] sm:$0xff]  ;;  %v150_v29 = vld [vmem:[%s673_s3 + $0x40] sm:$0xff]  ;;  %v151_v30 = vld [vmem:[%s673_s3 + $0x48] sm:$0xff] }
   0xb   :  { %v446_v27 = vpack.c.bf16 %v149_v26, %v148_v25  ;;  %v450_v31 = vpack.c.bf16 %v151_v30, %v150_v29  ;;  %v152_v32 = vld [vmem:[%s673_s3 + $0x50] sm:$0xff]  ;;  %v153_v33 = vld [vmem:[%s673_s3 + $0x58] sm:$0xff]  ;;  %v154_v35 = vld [vmem:[%s673_s3 + $0x60] sm:$0xff] }
   0xc   :  { %424 = vmatpush3.bf16.xpose.msk.msra.mxu0 %vm536_vm1, %v422_v12  ;;  %v454_v34 = vpack.c.bf16 %v153_v33, %v152_v32  ;;  %v155_v36 = vld [vmem:[%s673_s3 + $0x68] sm:$0xff]  ;;  %v156_v38 = vld [vmem:[%s673_s3 + $0x70] sm:$0xff]  ;;  %v157_v39 = vld [vmem:[%s673_s3 + $0x78] sm:$0xff]  ;;  %s301_s3 = sshll.u32 %s496_s20, 4  ;;  %s302_s3 = int_to_ptr.vmem [resolvable:$true] %s301_s3 }
   0xd   :  { %425 = vmatprep.subr.bf16.mxu0 %v493_v2  ;;  %440 = vmatpush3.bf16.xpose.msk.msra.mxu1 %vm558_vm4, %v438_v15  ;;  %v458_v37 = vpack.c.bf16 %v155_v36, %v154_v35  ;;  %v462_v40 = vpack.c.bf16 %v157_v39, %v156_v38  ;;  %v309_v41 = vld [vmem:[%s672_s2] ss:$0 sm:$0xff]  ;;  %s469_s21 = scalar_lea.vmem %s302_s3, 128  ;;  %p474_p1 = scmp.lt.s32.totalorder %s302_s3, %s302_s3 }
   0xe   :  { %441 = vmatprep.subr.bf16.mxu1 %v493_v2  ;;  %v336_v46 = vld [vmem:[%s674_s4] ss:$0 sm:$0xff]  ;;  %p470_p0 = scmp.ne.s32.totalorder %s302_s3, %s469_s21  ;;  %p475_p2 = scmp.lt.s32.totalorder %s469_s21, %s469_s21 }
  0x10   :  { %p476_p3 = por %p475_p2, %p474_p1 }
  0x12   :  { %p477_p4 = pnand %p476_p3, %p470_p0 }
  0x14   :  { %428 = vmatpush3.bf16.xpose.msk.msra.mxu0 %vm536_vm1, %v426_v18 }
  0x15   :  { %429 = vmatprep.subr.bf16.mxu0 %v493_v2  ;;  %444 = vmatpush3.bf16.xpose.msk.msra.mxu1 %vm558_vm4, %v442_v21 }
  0x16   :  { %445 = vmatprep.subr.bf16.mxu1 %v493_v2 }
  0x1c   :  { %432 = vmatpush3.bf16.xpose.msk.msra.mxu0 %vm536_vm1, %v430_v24 }
  0x1d   :  { %448 = vmatpush3.bf16.xpose.msk.msra.mxu1 %vm558_vm4, %v446_v27 }
  0x1e   :  { %449 = vmatprep.subr.bf16.mxu1 %v493_v2 }
  0x23   :  { %380 = vmatmul.mubr.msk.f32.vlgmr.msra.gmra.mrb[0].mxu0 %vm42_vm0, %v26_v28 }
  0x25   :  { %452 = vmatpush3.bf16.xpose.msk.msra.mxu1 %vm558_vm4, %v450_v31 }
  0x26   :  { %453 = vmatprep.subr.bf16.mxu1 %v493_v2 }
  0x2d   :  { %456 = vmatpush3.bf16.xpose.msk.msra.mxu1 %vm558_vm4, %v454_v34 }
  0x2e   :  { %457 = vmatprep.subr.bf16.mxu1 %v493_v2 }
  0x35   :  { %460 = vmatpush3.bf16.xpose.msk.msra.mxu1 %vm558_vm4, %v458_v37 }
  0x36   :  { %461 = vmatprep.subr.bf16.mxu1 %v493_v2 }
  0x3d   :  { %464 = vmatpush3.bf16.xpose.msk.msra.mxu1 %vm558_vm4, %v462_v40 }
  0xf6   :  { %v136_v42 = vpop.f32.mrb[0].mxu0 }
  0xf7   :  { %v137_v43 = vadd.f32 %v309_v41, %v136_v42  ;;  %v381_v44 = vpop.f32.mrb[1].mxu0 }
  0xf9   :  { %v140_v45 = vmax.f32 %v137_v43, 0.0 }
  0xfb   :  { %415 = vmatmul.mubr.msk.f32.vlgmr.msra.gmra.mrb[0].mxu1 %vm158_vm2, %v140_v45 }
 0x1ce   :  { %v276_v47 = vpop.f32.mrb[0].mxu1 }
 0x1cf   :  { %v293_v48 = vadd.f32 %v336_v46, %v276_v47  ;;  %v416_v49 = vpop.f32.mrb[1].mxu1 }
 0x1d1   :  { %294 = vst [vmem:[#allocation3] sm:$0xff] %v293_v48 }
 0x1d2   :  { %480 = shalt.err (!%p477_p4)
}
 0x1d3   :  { %s481_s23 = scalar_lea.hbm %s675_s5, 128 }
 0x1d4   :  { %p482_p5 = scmp.ne.s32.totalorder %s675_s5, %s481_s23  ;;  %p485_p6 = scmp.lt.u32.totalorder %s481_s23, %s675_s5 }
 0x1d6   :  { %p487_p7 = pnand %p485_p6, %p482_p5 }
 0x1d8   :  { %490 = shalt.err (!%p487_p7)
}
 0x1d9   :  { %304 = dma.vmem_to_hbm [thread:$0]  %s302_s3, 128, %s675_s5, [#allocation4]  }
 0x1da   :  { %491 = dma.done.wait [#allocation4], 128  }
 0x1db   :  { %492 = vsyncadd [#allocation4], 4294967168 }
 0x1dc   :  { %308 = vsyncpa [#allocation4], 1 }

</bundles_post_ra>
